<compile_context>
chip_gen: v6e
topology: v6e:2x2x1
jax: 0.10.0
libtpu: 0.0.40
codegen_flags: <defaults>
</compile_context>

<pallas_src>
import functools
import math

import jax
import jax.numpy as jnp
from jax.experimental import pallas as pl
from jax.experimental.pallas import tpu as pltpu

EPS = 1e-5


def _round_up(x, m):
    return ((x + m - 1) // m) * m


def _pad_axis(a, axis, target):
    pad = target - a.shape[axis]
    if pad == 0:
        return a
    widths = [(0, 0)] * a.ndim
    widths[axis] = (0, pad)
    return jnp.pad(a, widths)


def _meta_multi_fcbn_kernel(
    x_ref, w1_ref, w2_ref, w3_ref, g1_ref, b1_ref, g2_ref, b2_ref, o_ref,
    *, use_nonlinear, inv_n, n_real, mxu_dtype,
):
    x = x_ref[...]                                           # (1, Np), zeros in padded lanes
    np_k = x.shape[-1]

    # ---- linear1 + BN1 folded into a per-feature affine of x (VPU only) ----
    # Batch stats from a single (1, Np) row; padded lanes are zero so the sums
    # are exact when divided by the real N.
    sx = jnp.sum(x, axis=1, keepdims=True)                   # (1, 1)
    sxx = jnp.sum(x * x, axis=1, keepdims=True)              # (1, 1)
    mean_x = sx * inv_n
    var_x = jnp.maximum(sxx * inv_n - mean_x * mean_x, 0.0)  # clamp (one-pass var)

    w1 = w1_ref[...]                                         # (H, 1)
    g1 = g1_ref[...]
    b1 = b1_ref[...]
    inv_std1 = jax.lax.rsqrt(w1 * w1 * var_x + EPS)          # (H, 1)
    a1 = w1 * g1 * inv_std1                                  # (H, 1)
    s1 = b1 - w1 * mean_x * g1 * inv_std1                    # (H, 1)

    h = x * a1 + s1                                          # (H, Np), 2 VALU passes
    if n_real < np_k:
        # Zero padded lanes so BN2 statistics stay exact (relu/tanh keep zeros).
        lane = jax.lax.broadcasted_iota(jnp.int32, (1, np_k), 1)
        h = jnp.where(lane < n_real, h, 0.0)
    if use_nonlinear == "relu":
        h = jnp.maximum(h, 0.0)
    elif use_nonlinear == "tanh":
        h = jnp.tanh(h)                                      # EUP

    # ---- linear2: the only matmul -> MXU (bf16 in, f32 accumulate) ----
    h2 = jnp.dot(w2_ref[...].astype(mxu_dtype), h.astype(mxu_dtype),
                 preferred_element_type=jnp.float32)         # (H, Np) f32

    # ---- BN2 statistics (padded lanes of h2 are zero -> exact) ----
    mu2 = jnp.sum(h2, axis=1, keepdims=True) * inv_n         # (H, 1)
    ex2 = jnp.sum(h2 * h2, axis=1, keepdims=True) * inv_n    # (H, 1)
    var2 = jnp.maximum(ex2 - mu2 * mu2, 0.0)
    scale2 = g2_ref[...] * jax.lax.rsqrt(var2 + EPS)         # (H, 1)
    shift2 = b2_ref[...] - mu2 * scale2                      # (H, 1)
    w3 = w3_ref[...]                                         # (H, 1)

    if use_nonlinear is None:
        # Fold w3 into BN2: skip the full (H, Np) BN2-apply and w3*h passes.
        ws = w3 * scale2                                     # (H, 1)
        c = jnp.sum(w3 * shift2, axis=0, keepdims=True)      # (1, 1)
        o = jnp.sum(ws * h2, axis=0, keepdims=True) + c      # (1, Np)
    else:
        y = h2 * scale2 + shift2                             # (H, Np)
        if use_nonlinear == "relu":
            y = jnp.maximum(y, 0.0)
        else:  # "tanh"
            y = jnp.tanh(y)
        o = jnp.sum(w3 * y, axis=0, keepdims=True)           # (1, Np)

    o_ref[...] = o                                           # lane-dense full store


def _vmem_limit_bytes(hp, np_):
    """Per-grid-step VMEM footprint (double-buffered inputs + activations)."""
    f32, bf16, dbuf = 4, 2, 2
    weights = hp * hp * f32 * dbuf + 6 * hp * f32 * dbuf
    io = 2 * np_ * f32 * dbuf
    acts = 3 * hp * np_ * f32 + hp * np_ * bf16 + hp * hp * bf16
    need = int((weights + io + acts) * 1.5) + (1 << 20)      # headroom
    try:
        cap = pltpu.get_tpu_info().vmem_capacity_bytes       # 64 MiB on v7x, 128 on v5e/v6e
    except Exception:
        cap = 64 * 1024 * 1024
    return int(max(min(need, int(cap * 0.8)), 16 * 1024 * 1024))


def meta_multi_fcbn_tasks(x, params, use_nonlinear=None, mxu_dtype=jnp.bfloat16):
    """Batched over independent tasks.

    x: (T, N, 1) float32.  params leaves carry a leading task axis T
    (w1/w3/g*/b*: (T, H, 1), w2: (T, H, H)).  Returns (T, N, 1).
    """
    t_tasks, n, _ = x.shape
    hidden = params["w2"].shape[-1]
    np_ = _round_up(max(n, 1), 128)        # lane-dense batch axis
    hp = _round_up(hidden, 8)              # sublane-aligned feature axis

    # Batch along lanes; zero-pad lanes (exact — see kernel masking).
    xt = _pad_axis(x[:, :, 0][:, None, :].astype(jnp.float32), 2, np_)   # (T, 1, Np)

    pad_h = lambda a: _pad_axis(a.astype(jnp.float32), 1, hp)            # zero-pad features
    w1 = pad_h(params["w1"])
    w3 = pad_h(params["w3"])
    g1 = pad_h(params["g1"])
    b1 = pad_h(params["b1"])
    g2 = pad_h(params["g2"])
    b2 = pad_h(params["b2"])
    w2 = _pad_axis(_pad_axis(params["w2"].astype(jnp.float32), 1, hp), 2, hp)

    kernel = functools.partial(
        _meta_multi_fcbn_kernel,
        use_nonlinear=use_nonlinear, inv_n=1.0 / n, n_real=n, mxu_dtype=mxu_dtype)

    # Per-task blocks: leading task dim squeezed out of the kernel refs.
    spec3 = lambda a: pl.BlockSpec((None,) + a.shape[1:], lambda t: (t, 0, 0))

    out = pl.pallas_call(
        kernel,
        out_shape=jax.ShapeDtypeStruct((t_tasks, 1, np_), jnp.float32),
        grid=(t_tasks,),
        in_specs=[spec3(xt), spec3(w1), spec3(w2), spec3(w3),
                  spec3(g1), spec3(b1), spec3(g2), spec3(b2)],
        out_specs=pl.BlockSpec((None, 1, np_), lambda t: (t, 0, 0)),
        compiler_params=pltpu.CompilerParams(
            dimension_semantics=("parallel",),
            vmem_limit_bytes=_vmem_limit_bytes(hp, np_)),
    )(xt, w1, w2, w3, g1, b1, g2, b2)

    return out[:, 0, :n][..., None]                          # (T, N, 1)


def meta_multi_fcbn(x, params, use_nonlinear=None, mxu_dtype=jnp.bfloat16):
    """Single module instance.  x: (N, 1) float32.  Returns (N, 1)."""
    params_t = jax.tree_util.tree_map(lambda a: a[None], params)
    out = meta_multi_fcbn_tasks(x[None], params_t, use_nonlinear, mxu_dtype)
    return out[0]


def init_params(key, hidden_size):
    """Deterministic synthetic init (Kaiming-uniform-like bound for linears).

    Layouts (kernel-friendly, feature axis on sublanes):
      w1: (H, 1)  == PyTorch linear1.weight (out, in)
      w2: (H, H)  == PyTorch linear2.weight (out, in)
      w3: (H, 1)  == PyTorch linear3.weight.T  (weight is (1, H))
      g*, b*: (H, 1) BatchNorm affine (gamma=1, beta=0)
    """
    k1, k2, k3 = jax.random.split(key, 3)

    def lin(k, shape, fan_in):
        bound = 1.0 / math.sqrt(float(fan_in))
        return jax.random.uniform(k, shape, jnp.float32, -bound, bound)

    return {
        "w1": lin(k1, (hidden_size, 1), 1),
        "w2": lin(k2, (hidden_size, hidden_size), hidden_size),
        "w3": lin(k3, (hidden_size, 1), hidden_size),
        "g1": jnp.ones((hidden_size, 1), jnp.float32),
        "b1": jnp.zeros((hidden_size, 1), jnp.float32),
        "g2": jnp.ones((hidden_size, 1), jnp.float32),
        "b2": jnp.zeros((hidden_size, 1), jnp.float32),
    }


def _nonlin_ref(h, use_nonlinear):
    if use_nonlinear == "relu":
        return jnp.maximum(h, 0.0)
    if use_nonlinear == "tanh":
        return jnp.tanh(h)
    return h


def reference(x, params, use_nonlinear=None):
    """Pure-JAX reference mirroring PyTorch training-mode forward (std layout)."""
    h = x @ params["w1"].T                                        # (N, H)
    mu = jnp.mean(h, axis=0, keepdims=True)
    var = jnp.mean((h - mu) ** 2, axis=0, keepdims=True)
    h = (h - mu) / jnp.sqrt(var + EPS) * params["g1"].T + params["b1"].T
    h = _nonlin_ref(h, use_nonlinear)
    h = h @ params["w2"].T                                        # (N, H)
    mu = jnp.mean(h, axis=0, keepdims=True)
    var = jnp.mean((h - mu) ** 2, axis=0, keepdims=True)
    h = (h - mu) / jnp.sqrt(var + EPS) * params["g2"].T + params["b2"].T
    h = _nonlin_ref(h, use_nonlinear)
    return h @ params["w3"]                                       # (N, 1)


if __name__ == "__main__":
    key = jax.random.PRNGKey(0)
    kx, kp = jax.random.split(key)

    batch = 8
    hidden = 32

    x = jax.random.normal(kx, (batch, 1), jnp.float32)
    params = init_params(kp, hidden)

    ok = True
    for nl in (None, "relu", "tanh"):
        # Fast path: bf16 MXU operands, f32 accumulation.
        out = jax.block_until_ready(meta_multi_fcbn(x, params, use_nonlinear=nl))
        ref = reference(x, params, use_nonlinear=nl)
        ok &= (out.shape == (batch, 1))
        ok &= bool(jnp.allclose(out, ref, atol=5e-2, rtol=5e-2))

        # Exact-semantics check: f32 MXU operands.
        out32 = jax.block_until_ready(
            meta_multi_fcbn(x, params, use_nonlinear=nl, mxu_dtype=jnp.float32))
        ok &= bool(jnp.allclose(out32, ref, atol=2e-4, rtol=2e-4))

    # Multi-task path: leading "parallel" grid axis over independent tasks.
    n_tasks = 4
    task_keys = jax.random.split(jax.random.PRNGKey(1), n_tasks)
    params_list = [init_params(k, hidden) for k in task_keys]
    params_t = jax.tree_util.tree_map(lambda *xs: jnp.stack(xs), *params_list)
    x_t = jax.random.normal(jax.random.PRNGKey(2), (n_tasks, batch, 1), jnp.float32)

    out_t = jax.block_until_ready(
        meta_multi_fcbn_tasks(x_t, params_t, use_nonlinear="tanh"))
    ref_t = jnp.stack([
        reference(x_t[t], params_list[t], use_nonlinear="tanh")
        for t in range(n_tasks)])
    ok &= (out_t.shape == (n_tasks, batch, 1))
    ok &= bool(jnp.allclose(out_t, ref_t, atol=5e-2, rtol=5e-2))

    print("KERNEL_OK" if ok else "KERNEL_MISMATCH")
</pallas_src>

<mosaic_0001>
module attributes {stable_mosaic.version = 11 : i64} {
  func.func @_meta_multi_fcbn_kernel(%arg0: i32, %arg1: memref<1x1x128xf32, #tpu.memory_space<vmem>>, %arg2: memref<1x32x1xf32, #tpu.memory_space<vmem>>, %arg3: memref<1x32x32xf32, #tpu.memory_space<vmem>>, %arg4: memref<1x32x1xf32, #tpu.memory_space<vmem>>, %arg5: memref<1x32x1xf32, #tpu.memory_space<vmem>>, %arg6: memref<1x32x1xf32, #tpu.memory_space<vmem>>, %arg7: memref<1x32x1xf32, #tpu.memory_space<vmem>>, %arg8: memref<1x32x1xf32, #tpu.memory_space<vmem>>, %arg9: memref<1x1x128xf32, #tpu.memory_space<vmem>>) attributes {dimension_semantics = [#tpu.dimension_semantics<parallel>], iteration_bounds = array<i64: 1>, scalar_prefetch = 0 : i64, scratch_operands = 0 : i64, tpu.core_type = #tpu.core_type<tc>, window_params = [{transform_indices = @transform_0, window_bounds = array<i64: 1, 1, 128>}, {transform_indices = @transform_1, window_bounds = array<i64: 1, 32, 1>}, {transform_indices = @transform_2, window_bounds = array<i64: 1, 32, 32>}, {transform_indices = @transform_3, window_bounds = array<i64: 1, 32, 1>}, {transform_indices = @transform_4, window_bounds = array<i64: 1, 32, 1>}, {transform_indices = @transform_5, window_bounds = array<i64: 1, 32, 1>}, {transform_indices = @transform_6, window_bounds = array<i64: 1, 32, 1>}, {transform_indices = @transform_7, window_bounds = array<i64: 1, 32, 1>}, {transform_indices = @transform_8, window_bounds = array<i64: 1, 1, 128>}]} {
    %c0 = arith.constant 0 : index
    %c0_0 = arith.constant 0 : index
    %c0_1 = arith.constant 0 : index
    %0 = vector.load %arg1[%c0, %c0_0, %c0_1] : memref<1x1x128xf32, #tpu.memory_space<vmem>>, vector<1x1x128xf32>
    %1 = vector.shape_cast %0 : vector<1x1x128xf32> to vector<1x128xf32>
    %cst = arith.constant dense<0.000000e+00> : vector<1xf32>
    %2 = vector.multi_reduction <add>, %1, %cst [1] : vector<1x128xf32> to vector<1xf32>
    %3 = vector.shape_cast %2 : vector<1xf32> to vector<1x1xf32>
    %4 = arith.mulf %1, %1 : vector<1x128xf32>
    %cst_2 = arith.constant dense<0.000000e+00> : vector<1xf32>
    %5 = vector.multi_reduction <add>, %4, %cst_2 [1] : vector<1x128xf32> to vector<1xf32>
    %6 = vector.shape_cast %5 : vector<1xf32> to vector<1x1xf32>
    %cst_3 = arith.constant 1.250000e-01 : f32
    %7 = vector.broadcast %cst_3 : f32 to vector<1x1xf32>
    %8 = arith.mulf %3, %7 : vector<1x1xf32>
    %cst_4 = arith.constant 1.250000e-01 : f32
    %9 = vector.broadcast %cst_4 : f32 to vector<1x1xf32>
    %10 = arith.mulf %6, %9 : vector<1x1xf32>
    %11 = arith.mulf %8, %8 : vector<1x1xf32>
    %12 = arith.subf %10, %11 : vector<1x1xf32>
    %cst_5 = arith.constant 0.000000e+00 : f32
    %13 = vector.broadcast %cst_5 : f32 to vector<1x1xf32>
    %14 = arith.maximumf %12, %13 : vector<1x1xf32>
    %c0_6 = arith.constant 0 : index
    %c0_7 = arith.constant 0 : index
    %c0_8 = arith.constant 0 : index
    %15 = vector.load %arg2[%c0_6, %c0_7, %c0_8] : memref<1x32x1xf32, #tpu.memory_space<vmem>>, vector<1x32x1xf32>
    %16 = vector.shape_cast %15 : vector<1x32x1xf32> to vector<32x1xf32>
    %c0_9 = arith.constant 0 : index
    %c0_10 = arith.constant 0 : index
    %c0_11 = arith.constant 0 : index
    %17 = vector.load %arg5[%c0_9, %c0_10, %c0_11] : memref<1x32x1xf32, #tpu.memory_space<vmem>>, vector<1x32x1xf32>
    %18 = vector.shape_cast %17 : vector<1x32x1xf32> to vector<32x1xf32>
    %c0_12 = arith.constant 0 : index
    %c0_13 = arith.constant 0 : index
    %c0_14 = arith.constant 0 : index
    %19 = vector.load %arg6[%c0_12, %c0_13, %c0_14] : memref<1x32x1xf32, #tpu.memory_space<vmem>>, vector<1x32x1xf32>
    %20 = vector.shape_cast %19 : vector<1x32x1xf32> to vector<32x1xf32>
    %21 = arith.mulf %16, %16 : vector<32x1xf32>
    %22 = vector.broadcast %14 : vector<1x1xf32> to vector<32x1xf32>
    %23 = arith.mulf %21, %22 : vector<32x1xf32>
    %cst_15 = arith.constant 9.99999974E-6 : f32
    %24 = vector.broadcast %cst_15 : f32 to vector<32x1xf32>
    %25 = arith.addf %23, %24 : vector<32x1xf32>
    %26 = math.rsqrt %25 : vector<32x1xf32>
    %27 = arith.mulf %16, %18 : vector<32x1xf32>
    %28 = arith.mulf %27, %26 : vector<32x1xf32>
    %29 = vector.broadcast %8 : vector<1x1xf32> to vector<32x1xf32>
    %30 = arith.mulf %16, %29 : vector<32x1xf32>
    %31 = arith.mulf %30, %18 : vector<32x1xf32>
    %32 = arith.mulf %31, %26 : vector<32x1xf32>
    %33 = arith.subf %20, %32 : vector<32x1xf32>
    %34 = vector.broadcast %1 : vector<1x128xf32> to vector<32x128xf32>
    %35 = vector.broadcast %28 : vector<32x1xf32> to vector<32x128xf32>
    %36 = arith.mulf %34, %35 : vector<32x128xf32>
    %37 = vector.broadcast %33 : vector<32x1xf32> to vector<32x128xf32>
    %38 = arith.addf %36, %37 : vector<32x128xf32>
    %39 = tpu.iota {dimensions = array<i32: 1>} : vector<1x128xi32>
    %c8_i32 = arith.constant 8 : i32
    %40 = vector.broadcast %c8_i32 : i32 to vector<1x128xi32>
    %41 = arith.cmpi slt, %39, %40 : vector<1x128xi32>
    %cst_16 = arith.constant 0.000000e+00 : f32
    %42 = vector.shape_cast %41 : vector<1x128xi1> to vector<1x128xi1>
    %43 = vector.broadcast %42 : vector<1x128xi1> to vector<32x128xi1>
    %44 = vector.broadcast %cst_16 : f32 to vector<32x128xf32>
    %45 = arith.select %43, %38, %44 : vector<32x128xi1>, vector<32x128xf32>
    %c0_17 = arith.constant 0 : index
    %c0_18 = arith.constant 0 : index
    %c0_19 = arith.constant 0 : index
    %46 = vector.load %arg3[%c0_17, %c0_18, %c0_19] : memref<1x32x32xf32, #tpu.memory_space<vmem>>, vector<1x32x32xf32>
    %47 = vector.shape_cast %46 : vector<1x32x32xf32> to vector<32x32xf32>
    %48 = arith.truncf %47 : vector<32x32xf32> to vector<32x32xbf16>
    %49 = arith.truncf %45 : vector<32x128xf32> to vector<32x128xbf16>
    %cst_20 = arith.constant dense<0.000000e+00> : vector<32x128xf32>
    %50 = tpu.matmul %48, %49, %cst_20 {dimension_numbers = #tpu.dot_dimension_numbers<[1], [0], [0], [1], [0, 0, 1, 1], [], []>} : vector<32x32xbf16>, vector<32x128xbf16>, vector<32x128xf32> -> vector<32x128xf32>
    %cst_21 = arith.constant dense<0.000000e+00> : vector<32xf32>
    %51 = vector.multi_reduction <add>, %50, %cst_21 [1] : vector<32x128xf32> to vector<32xf32>
    %52 = vector.shape_cast %51 : vector<32xf32> to vector<32x1xf32>
    %cst_22 = arith.constant 1.250000e-01 : f32
    %53 = vector.broadcast %cst_22 : f32 to vector<32x1xf32>
    %54 = arith.mulf %52, %53 : vector<32x1xf32>
    %55 = arith.mulf %50, %50 : vector<32x128xf32>
    %cst_23 = arith.constant dense<0.000000e+00> : vector<32xf32>
    %56 = vector.multi_reduction <add>, %55, %cst_23 [1] : vector<32x128xf32> to vector<32xf32>
    %57 = vector.shape_cast %56 : vector<32xf32> to vector<32x1xf32>
    %cst_24 = arith.constant 1.250000e-01 : f32
    %58 = vector.broadcast %cst_24 : f32 to vector<32x1xf32>
    %59 = arith.mulf %57, %58 : vector<32x1xf32>
    %60 = arith.mulf %54, %54 : vector<32x1xf32>
    %61 = arith.subf %59, %60 : vector<32x1xf32>
    %cst_25 = arith.constant 0.000000e+00 : f32
    %62 = vector.broadcast %cst_25 : f32 to vector<32x1xf32>
    %63 = arith.maximumf %61, %62 : vector<32x1xf32>
    %c0_26 = arith.constant 0 : index
    %c0_27 = arith.constant 0 : index
    %c0_28 = arith.constant 0 : index
    %64 = vector.load %arg7[%c0_26, %c0_27, %c0_28] : memref<1x32x1xf32, #tpu.memory_space<vmem>>, vector<1x32x1xf32>
    %65 = vector.shape_cast %64 : vector<1x32x1xf32> to vector<32x1xf32>
    %cst_29 = arith.constant 9.99999974E-6 : f32
    %66 = vector.broadcast %cst_29 : f32 to vector<32x1xf32>
    %67 = arith.addf %63, %66 : vector<32x1xf32>
    %68 = math.rsqrt %67 : vector<32x1xf32>
    %69 = arith.mulf %65, %68 : vector<32x1xf32>
    %c0_30 = arith.constant 0 : index
    %c0_31 = arith.constant 0 : index
    %c0_32 = arith.constant 0 : index
    %70 = vector.load %arg8[%c0_30, %c0_31, %c0_32] : memref<1x32x1xf32, #tpu.memory_space<vmem>>, vector<1x32x1xf32>
    %71 = vector.shape_cast %70 : vector<1x32x1xf32> to vector<32x1xf32>
    %72 = arith.mulf %54, %69 : vector<32x1xf32>
    %73 = arith.subf %71, %72 : vector<32x1xf32>
    %c0_33 = arith.constant 0 : index
    %c0_34 = arith.constant 0 : index
    %c0_35 = arith.constant 0 : index
    %74 = vector.load %arg4[%c0_33, %c0_34, %c0_35] : memref<1x32x1xf32, #tpu.memory_space<vmem>>, vector<1x32x1xf32>
    %75 = vector.shape_cast %74 : vector<1x32x1xf32> to vector<32x1xf32>
    %76 = arith.mulf %75, %69 : vector<32x1xf32>
    %77 = arith.mulf %75, %73 : vector<32x1xf32>
    %cst_36 = arith.constant dense<0.000000e+00> : vector<1xf32>
    %78 = vector.multi_reduction <add>, %77, %cst_36 [0] : vector<32x1xf32> to vector<1xf32>
    %79 = vector.shape_cast %78 : vector<1xf32> to vector<1x1xf32>
    %80 = vector.broadcast %76 : vector<32x1xf32> to vector<32x128xf32>
    %81 = arith.mulf %80, %50 : vector<32x128xf32>
    %cst_37 = arith.constant dense<0.000000e+00> : vector<128xf32>
    %82 = vector.multi_reduction <add>, %81, %cst_37 [0] : vector<32x128xf32> to vector<128xf32>
    %83 = vector.shape_cast %82 : vector<128xf32> to vector<1x128xf32>
    %84 = vector.broadcast %79 : vector<1x1xf32> to vector<1x128xf32>
    %85 = arith.addf %83, %84 : vector<1x128xf32>
    %c0_38 = arith.constant 0 : index
    %c0_39 = arith.constant 0 : index
    %c0_40 = arith.constant 0 : index
    %86 = vector.load %arg9[%c0_38, %c0_39, %c0_40] : memref<1x1x128xf32, #tpu.memory_space<vmem>>, vector<1x1x128xf32>
    %87 = vector.shape_cast %86 : vector<1x1x128xf32> to vector<1x128xf32>
    %88 = vector.shape_cast %85 : vector<1x128xf32> to vector<1x1x128xf32>
    tpu.vector_store %arg9[%c0_38, %c0_39, %c0_40], %88 {strides = array<i32>} : memref<1x1x128xf32, #tpu.memory_space<vmem>>, vector<1x1x128xf32>,
    return
  }
  func.func @transform_0(%arg0: i32) -> (i32, i32, i32) {
    %c0_i32 = arith.constant 0 : i32
    %c0_i32_0 = arith.constant 0 : i32
    %c0_i32_1 = arith.constant 0 : i32
    return %arg0, %c0_i32, %c0_i32_0 : i32, i32, i32
  }
  func.func @transform_1(%arg0: i32) -> (i32, i32, i32) {
    %c0_i32 = arith.constant 0 : i32
    %c0_i32_0 = arith.constant 0 : i32
    %c0_i32_1 = arith.constant 0 : i32
    return %arg0, %c0_i32, %c0_i32_0 : i32, i32, i32
  }
  func.func @transform_2(%arg0: i32) -> (i32, i32, i32) {
    %c0_i32 = arith.constant 0 : i32
    %c0_i32_0 = arith.constant 0 : i32
    %c0_i32_1 = arith.constant 0 : i32
    return %arg0, %c0_i32, %c0_i32_0 : i32, i32, i32
  }
  func.func @transform_3(%arg0: i32) -> (i32, i32, i32) {
    %c0_i32 = arith.constant 0 : i32
    %c0_i32_0 = arith.constant 0 : i32
    %c0_i32_1 = arith.constant 0 : i32
    return %arg0, %c0_i32, %c0_i32_0 : i32, i32, i32
  }
  func.func @transform_4(%arg0: i32) -> (i32, i32, i32) {
    %c0_i32 = arith.constant 0 : i32
    %c0_i32_0 = arith.constant 0 : i32
    %c0_i32_1 = arith.constant 0 : i32
    return %arg0, %c0_i32, %c0_i32_0 : i32, i32, i32
  }
  func.func @transform_5(%arg0: i32) -> (i32, i32, i32) {
    %c0_i32 = arith.constant 0 : i32
    %c0_i32_0 = arith.constant 0 : i32
    %c0_i32_1 = arith.constant 0 : i32
    return %arg0, %c0_i32, %c0_i32_0 : i32, i32, i32
  }
  func.func @transform_6(%arg0: i32) -> (i32, i32, i32) {
    %c0_i32 = arith.constant 0 : i32
    %c0_i32_0 = arith.constant 0 : i32
    %c0_i32_1 = arith.constant 0 : i32
    return %arg0, %c0_i32, %c0_i32_0 : i32, i32, i32
  }
  func.func @transform_7(%arg0: i32) -> (i32, i32, i32) {
    %c0_i32 = arith.constant 0 : i32
    %c0_i32_0 = arith.constant 0 : i32
    %c0_i32_1 = arith.constant 0 : i32
    return %arg0, %c0_i32, %c0_i32_0 : i32, i32, i32
  }
  func.func @transform_8(%arg0: i32) -> (i32, i32, i32) {
    %c0_i32 = arith.constant 0 : i32
    %c0_i32_0 = arith.constant 0 : i32
    %c0_i32_1 = arith.constant 0 : i32
    return %arg0, %c0_i32, %c0_i32_0 : i32, i32, i32
  }
}

</mosaic_0001>

<bundles_post_ra>
// kernel: tpu_custom_call.1
= control target key start
LH: loop header
LB: loop body
LE: loop exit
PB: predicated region body
PF: predicated region fallthrough
CT: control target
= control target key end

     0   :  { %vm32_vm0 = vcmask 1040384   ;;  %s618_s0 = inlined_call_operand.vmem [shape: f32[1,1,128], index: 0, kind: input, shape index: {}]   ;;  %s619_s1 = inlined_call_operand.vmem [shape: f32[1,32,1], index: 1, kind: input, shape index: {}]   ;;  %s620_s2 = inlined_call_operand.vmem [shape: f32[1,32,32], index: 2, kind: input, shape index: {}]   ;;  %s621_s3 = inlined_call_operand.vmem [shape: f32[1,32,1], index: 3, kind: input, shape index: {}]   ;;  %s622_s4 = inlined_call_operand.vmem [shape: f32[1,32,1], index: 4, kind: input, shape index: {}]   ;;  %s623_s5 = inlined_call_operand.vmem [shape: f32[1,32,1], index: 5, kind: input, shape index: {}]   ;;  %s624_s6 = inlined_call_operand.vmem [shape: f32[1,32,1], index: 6, kind: input, shape index: {}]   ;;  %s625_s7 = inlined_call_operand.vmem [shape: f32[1,32,1], index: 7, kind: input, shape index: {}]   ;;  %s626_s8 = inlined_call_operand.hbm [shape: f32[1,1,128], index: 8, kind: output, shape index: {}]  }
   0x1   :  { %v492_v0 = vld [vmem:[%s618_s0] sm:$0x1] }
   0x2   :  { %13 = vsyncpa [#allocation3], 0  ;;  %v33_v1 = vsel %vm32_vm0, %v492_v0, 0.0  ;;  %v36_v2 = vmul.f32 %v492_v0, %v492_v0  ;;  %v442_v4 = vmov 0   ;;  %v61_v6 = vlaneseq  ;;  %v47_v13 = vld [vmem:[%s619_s1 + $0x10] sm:$0xff]  ;;  %v48_v14 = vld [vmem:[%s619_s1 + $0x18] sm:$0xff] }
   0x3   :  { %34 = vadd.xlane.f32.xlu0 %v33_v1  ;;  %402 = vset.pattern.permute.xlu1 %v442_v4  ;;  %v59_v17 = vmul.f32 %v47_v13, %v47_v13  ;;  %v60_v18 = vmul.f32 %v48_v14, %v48_v14  ;;  %v45_v19 = vld [vmem:[%s619_s1] sm:$0xff]  ;;  %v46_v24 = vld [vmem:[%s619_s1 + $0x8] sm:$0xff]  ;;  %v51_v34 = vld [vmem:[%s622_s4 + $0x10] sm:$0xff]  ;;  %vm176_vm1 = vcmask 261120   ;;  %vm312_vm4 = vcmask 7168  }
   0x4   :  { %v37_v3 = vsel %vm32_vm0, %v36_v2, 0.0  ;;  %403 = vset.pattern.permute.xlu0 %v442_v4  ;;  %v62_v9 = vshrl.u32 %v61_v6, 7  ;;  %v57_v21 = vmul.f32 %v45_v19, %v45_v19  ;;  %v58_v28 = vmul.f32 %v46_v24, %v46_v24  ;;  %v55_v38 = vld [vmem:[%s623_s5 + $0x10] sm:$0xff]  ;;  %v52_v39 = vld [vmem:[%s622_s4 + $0x18] sm:$0xff]  ;;  %v49_v45 = vld [vmem:[%s622_s4] sm:$0xff] }
   0x5   :  { %v79_v35 = vmul.f32 %v51_v34, %v47_v13  ;;  %v80_v42 = vmul.f32 %v52_v39, %v48_v14  ;;  %v77_v47 = vmul.f32 %v49_v45, %v45_v19  ;;  %v50_v50 = vld [vmem:[%s622_s4 + $0x8] sm:$0xff]  ;;  %v56_v58 = vld [vmem:[%s623_s5 + $0x18] sm:$0xff]  ;;  %v53_v63 = vld [vmem:[%s623_s5] sm:$0xff] }
   0x6   :  { %v504_v15 = vsub.s32 0, %v62_v9  ;;  %v78_v52 = vmul.f32 %v50_v50, %v46_v24  ;;  %v54_v4 = vld [vmem:[%s623_s5 + $0x8] sm:$0xff] }
   0x7   :  { %38 = vadd.xlane.f32.xlu0 %v37_v3 }
  0x8c   :  { %v35_v5 = vpop.xlane.xlu0 %34 }
  0x8d   :  { %v40_v7 = vmul.f32 0.125, %v35_v5 }
  0x8f   :  { %v42_v10 = vmul.f32 %v40_v7, %v40_v7  ;;  %v88_v31 = vrot.slane %v40_v7, %v504_v15  ;;  %v168_v7 = vld [vmem:[%s620_s2] sm:$0xff] }
  0x90   :  { %v39_v8 = vpop.xlane.xlu0 %38 }
  0x91   :  { %v41_v11 = vmul.f32 0.125, %v39_v8  ;;  %v91_v33 = vmul.f32 %v88_v31, %v47_v13  ;;  %v92_v49 = vmul.f32 %v88_v31, %v48_v14  ;;  %v89_v55 = vmul.f32 %v88_v31, %v45_v19  ;;  %v169_v8 = vld [vmem:[%s620_s2 + $0x8] sm:$0xff] }
  0x92   :  { %v90_v60 = vmul.f32 %v88_v31, %v46_v24  ;;  %v172_v9 = vpack.c.bf16 %v169_v8, %v168_v7  ;;  %v109_v13 = vrot.slane %v492_v0, %v504_v15  ;;  %v160_v14 = vand.u32 127, %v61_v6  ;;  %v170_v6 = vld [vmem:[%s620_s2 + $0x10] sm:$0xff] }
  0x93   :  { %v43_v12 = vsub.f32 %v41_v11, %v42_v10  ;;  %v95_v36 = vmul.f32 %v91_v33, %v51_v34  ;;  %v96_v54 = vmul.f32 %v92_v49, %v52_v39  ;;  %v93_v59 = vmul.f32 %v89_v55, %v49_v45 }
  0x94   :  { %v94_v1 = vmul.f32 %v90_v60, %v50_v50  ;;  %396 = vmatprep.mubr.msk.bf16.mxu0 %vm176_vm1, %v172_v9  ;;  %vm161_vm2 = vcmp.lt.s32.totalorder %v160_v14, 8  ;;  %v272_v9 = vld [vmem:[%s624_s6] sm:$0xff]  ;;  %v275_v14 = vld [vmem:[%s624_s6 + $0x18] sm:$0xff] }
  0x95   :  { %v44_v16 = vmax.f32 %v43_v12, 0.0  ;;  %vm380_vm3 = vmpackc.low %vm161_vm2, %vm161_vm2 }
  0x97   :  { %v64_v20 = vrot.slane %v44_v16, %v504_v15  ;;  %v171_v15 = vld [vmem:[%s620_s2 + $0x18] sm:$0xff] }
  0x99   :  { %v67_v22 = vmul.f32 %v64_v20, %v59_v17  ;;  %v68_v23 = vmul.f32 %v64_v20, %v60_v18  ;;  %v65_v27 = vmul.f32 %v64_v20, %v57_v21  ;;  %v66_v30 = vmul.f32 %v64_v20, %v58_v28 }
  0x9b   :  { %v71_v25 = vadd.f32 1e-05, %v67_v22  ;;  %v72_v26 = vadd.f32 1e-05, %v68_v23  ;;  %v69_v29 = vadd.f32 1e-05, %v65_v27 }
  0x9c   :  { %v70_v32 = vadd.f32 1e-05, %v66_v30  ;;  %v173_v30 = vpack.c.bf16 %v171_v15, %v170_v6  ;;  %v291_v15 = vld [vmem:[%s625_s7 + $0x18] sm:$0xff] }
  0x9d   :  { %404 = vrsqrt.f32 %v71_v25 }
  0x9e   :  { %406 = vrsqrt.f32 %v72_v26 }
  0x9f   :  { %408 = vrsqrt.f32 %v69_v29 }
  0xa0   :  { %410 = vrsqrt.f32 %v70_v32 }
  0xaa   :  { %v405_v37 = vpop.eup %404 }
  0xab   :  { %v83_v40 = vmul.f32 %v405_v37, %v79_v35  ;;  %v99_v41 = vmul.f32 %v405_v37, %v95_v36  ;;  %v407_v43 = vpop.eup %406 }
  0xac   :  { %v84_v46 = vmul.f32 %v407_v43, %v80_v42  ;;  %v409_v48 = vpop.eup %408  ;;  %v100_v57 = vmul.f32 %v407_v43, %v96_v54 }
  0xad   :  { %123 = vperm.xlu1 %402, %v83_v40   ;;  %v103_v44 = vsub.f32 %v55_v38, %v99_v41  ;;  %v81_v51 = vmul.f32 %v409_v48, %v77_v47  ;;  %v411_v53 = vpop.eup %410  ;;  %v97_v62 = vmul.f32 %v409_v48, %v93_v59 }
  0xae   :  { %v82_v56 = vmul.f32 %v411_v53, %v78_v52  ;;  %v104_v61 = vsub.f32 %v56_v58, %v100_v57  ;;  %v98_v3 = vmul.f32 %v411_v53, %v94_v1 }
  0xaf   :  { %147 = vperm.xlu0 %403, %v103_v44   ;;  %v101_v2 = vsub.f32 %v53_v63, %v97_v62 }
  0xb0   :  { %v102_v5 = vsub.f32 %v54_v4, %v98_v3 }
  0xb1   :  { %128 = vperm.xlu1 %402, %v84_v46  }
  0xb5   :  { %113 = vperm.xlu1 %402, %v81_v51  }
  0xb9   :  { %118 = vperm.xlu1 %402, %v82_v56  }
  0xbd   :  { %152 = vperm.xlu1 %402, %v104_v61  }
  0xc1   :  { %137 = vperm.xlu1 %402, %v101_v2  }
  0xc5   :  { %142 = vperm.xlu1 %402, %v102_v5  }
 0x128   :  { %v124_v10 = vpop.permute.xlu1 %123 }
 0x129   :  { %v133_v17 = vmul.f32 %v124_v10, %v109_v13 }
 0x12a   :  { %v148_v18 = vpop.permute.xlu0 %147 }
 0x12b   :  { %v157_v21 = vadd.f32 %v148_v18, %v133_v17  ;;  %v273_v18 = vld [vmem:[%s624_s6 + $0x8] sm:$0xff] }
 0x12c   :  { %v129_v11 = vpop.permute.xlu1 %128 }
 0x12d   :  { %v134_v19 = vmul.f32 %v129_v11, %v109_v13  ;;  %v300_v11 = vld [vmem:[%s621_s3] sm:$0xff] }
 0x130   :  { %v114_v12 = vpop.permute.xlu1 %113 }
 0x131   :  { %v131_v25 = vmul.f32 %v114_v12, %v109_v13 }
 0x134   :  { %v119_v16 = vpop.permute.xlu1 %118 }
 0x135   :  { %v132_v26 = vmul.f32 %v119_v16, %v109_v13 }
 0x138   :  { %v153_v20 = vpop.permute.xlu1 %152 }
 0x139   :  { %v158_v22 = vadd.f32 %v153_v20, %v134_v19  ;;  %v288_v20 = vld [vmem:[%s625_s7] sm:$0xff] }
 0x13b   :  { %v381_v23 = vpack.c.bf16 %v158_v22, %v157_v21  ;;  %v301_v22 = vld [vmem:[%s621_s3 + $0x8] sm:$0xff] }
 0x13c   :  { %v138_v24 = vpop.permute.xlu1 %137 }
 0x13d   :  { %392 = vmatprep.subr.msk.bf16.mxu0 %vm380_vm3, %v381_v23  ;;  %v155_v28 = vadd.f32 %v138_v24, %v131_v25  ;;  %v289_v25 = vld [vmem:[%s625_s7 + $0x8] sm:$0xff] }
 0x13e   :  { %393 = vmatpush3.bf16.msk.msra.mxu0 %vm380_vm3, %v381_v23 }
 0x140   :  { %v143_v27 = vpop.permute.xlu1 %142 }
 0x141   :  { %v156_v0 = vadd.f32 %v143_v27, %v132_v26  ;;  %v274_v26 = vld [vmem:[%s624_s6 + $0x10] sm:$0xff] }
 0x143   :  { %v384_v29 = vpack.c.bf16 %v156_v0, %v155_v28 }
 0x145   :  { %394 = vmatprep.subr.msk.bf16.mxu0 %vm380_vm3, %v384_v29 }
 0x146   :  { %395 = vmatpush3.bf16.msk.msra.mxu0 %vm380_vm3, %v384_v29  ;;  %v302_v29 = vld [vmem:[%s621_s3 + $0x10] sm:$0xff] }
 0x149   :  { %397 = vmatmul.mubr.msk.bf16.vlgmr.msra.gmra.mxu0 %vm176_vm1, %v173_v30 }
 0x209   :  { %v555_v31 = vpop.f32.mrf.mxu0 }
 0x20a   :  { %v246_v38 = vmul.f32 %v555_v31, %v555_v31 }
 0x20b   :  { %v557_v32 = vpop.f32.mrf.mxu0 }
 0x20c   :  { %232 = vadd.xlane.f32.xlu1 %v557_v32  ;;  %v244_v35 = vmul.f32 %v557_v32, %v557_v32 }
 0x20d   :  { %v560_v33 = vpop.f32.mrf.mxu0 }
 0x20e   :  { %v247_v36 = vmul.f32 %v560_v33, %v560_v33 }
 0x20f   :  { %v562_v34 = vpop.f32.mrf.mxu0 }
 0x210   :  { %236 = vadd.xlane.f32.xlu1 %v555_v31  ;;  %234 = vadd.xlane.f32.xlu0 %v562_v34  ;;  %v245_v37 = vmul.f32 %v562_v34, %v562_v34 }
 0x214   :  { %248 = vadd.xlane.f32.xlu1 %v244_v35  ;;  %254 = vadd.xlane.f32.xlu0 %v247_v36 }
 0x218   :  { %238 = vadd.xlane.f32.xlu1 %v560_v33 }
 0x21c   :  { %250 = vadd.xlane.f32.xlu1 %v245_v37  ;;  %v290_v37 = vld [vmem:[%s625_s7 + $0x10] sm:$0xff] }
 0x220   :  { %252 = vadd.xlane.f32.xlu1 %v246_v38 }
 0x295   :  { %v233_v39 = vpop.xlane.xlu1 %232 }
 0x296   :  { %v240_v41 = vmul.f32 0.125, %v233_v39 }
 0x298   :  { %v260_v44 = vmul.f32 %v240_v41, %v240_v41 }
 0x299   :  { %v237_v40 = vpop.xlane.xlu1 %236  ;;  %v235_v42 = vpop.xlane.xlu0 %234 }
 0x29a   :  { %v241_v49 = vmul.f32 0.125, %v235_v42  ;;  %v242_v55 = vmul.f32 0.125, %v237_v40  ;;  %v303_v42 = vld [vmem:[%s621_s3 + $0x18] sm:$0xff]  ;;  %s443_s3 = smov [#allocation2]  }
 0x29b   :  { %s372_s7 = sshll.u32 %s443_s3, 4  ;;  %s373_s7 = int_to_ptr.vmem [resolvable:$true] %s372_s7 }
 0x29c   :  { %v261_v57 = vmul.f32 %v241_v49, %v241_v49  ;;  %v262_v63 = vmul.f32 %v242_v55, %v242_v55  ;;  %s420_s5 = scalar_lea.vmem %s373_s7, 16  ;;  %s424_s9 = scalar_lea.vmem %s373_s7, 32 }
 0x29d   :  { %v249_v43 = vpop.xlane.xlu1 %248  ;;  %v255_v47 = vpop.xlane.xlu0 %254  ;;  %p421_p0 = scmp.ne.s32.totalorder %s373_s7, %s420_s5  ;;  %p425_p1 = scmp.lt.s32.totalorder %s373_s7, %s373_s7 }
 0x29e   :  { %v256_v45 = vmul.f32 0.125, %v249_v43  ;;  %v259_v53 = vmul.f32 0.125, %v255_v47  ;;  %p426_p2 = scmp.lt.s32.totalorder %s424_s9, %s420_s5 }
 0x2a0   :  { %v264_v46 = vsub.f32 %v256_v45, %v260_v44  ;;  %p427_p3 = por %p426_p2, %p425_p1 }
 0x2a1   :  { %v239_v48 = vpop.xlane.xlu1 %238 }
 0x2a2   :  { %v268_v50 = vmax.f32 %v264_v46, 0.0  ;;  %v243_v51 = vmul.f32 0.125, %v239_v48  ;;  %p428_p4 = pnand %p427_p3, %p421_p0 }
 0x2a4   :  { %v276_v52 = vadd.f32 1e-05, %v268_v50  ;;  %v263_v54 = vmul.f32 %v243_v51, %v243_v51 }
 0x2a5   :  { %v251_v56 = vpop.xlane.xlu1 %250 }
 0x2a6   :  { %412 = vrsqrt.f32 %v276_v52  ;;  %v267_v58 = vsub.f32 %v259_v53, %v263_v54  ;;  %v257_v59 = vmul.f32 0.125, %v251_v56 }
 0x2a8   :  { %v271_v60 = vmax.f32 %v267_v58, 0.0  ;;  %v265_v61 = vsub.f32 %v257_v59, %v261_v57 }
 0x2a9   :  { %v253_v62 = vpop.xlane.xlu1 %252 }
 0x2aa   :  { %v279_v1 = vadd.f32 1e-05, %v271_v60  ;;  %v269_v2 = vmax.f32 %v265_v61, 0.0  ;;  %v258_v3 = vmul.f32 0.125, %v253_v62 }
 0x2ac   :  { %414 = vrsqrt.f32 %v279_v1  ;;  %v277_v4 = vadd.f32 1e-05, %v269_v2  ;;  %v266_v5 = vsub.f32 %v258_v3, %v262_v63 }
 0x2ae   :  { %416 = vrsqrt.f32 %v277_v4  ;;  %v270_v7 = vmax.f32 %v266_v5, 0.0 }
 0x2b0   :  { %v278_v8 = vadd.f32 1e-05, %v270_v7 }
 0x2b2   :  { %418 = vrsqrt.f32 %v278_v8 }
 0x2b3   :  { %v413_v10 = vpop.eup %412 }
 0x2b4   :  { %v284_v12 = vmul.f32 %v413_v10, %v272_v9 }
 0x2b6   :  { %v304_v13 = vmul.f32 %v300_v11, %v284_v12  ;;  %v292_v17 = vmul.f32 %v284_v12, %v240_v41 }
 0x2b8   :  { %328 = vperm.xlu1 %402, %v304_v13   ;;  %v296_v24 = vsub.f32 %v288_v20, %v292_v17 }
 0x2b9   :  { %v415_v16 = vpop.eup %414 }
 0x2ba   :  { %v287_v19 = vmul.f32 %v415_v16, %v275_v14  ;;  %v308_v36 = vmul.f32 %v300_v11, %v296_v24 }
 0x2bb   :  { %v417_v21 = vpop.eup %416 }
 0x2bc   :  { %v285_v23 = vmul.f32 %v417_v21, %v273_v18  ;;  %v295_v27 = vmul.f32 %v287_v19, %v243_v51  ;;  %v313_v45 = vsel %vm312_vm4, %v308_v36, 0.0  ;;  %v307_v47 = vmul.f32 %v303_v42, %v287_v19 }
 0x2be   :  { %v305_v28 = vmul.f32 %v301_v22, %v285_v23  ;;  %v293_v0 = vmul.f32 %v285_v23, %v241_v49  ;;  %v299_v38 = vsub.f32 %v291_v15, %v295_v27 }
 0x2bf   :  { %v419_v6 = vpop.eup %418 }
 0x2c0   :  { %333 = vperm.xlu0 %403, %v305_v28   ;;  %v297_v30 = vsub.f32 %v289_v25, %v293_v0  ;;  %v286_v35 = vmul.f32 %v419_v6, %v274_v26  ;;  %v311_v48 = vmul.f32 %v303_v42, %v299_v38 }
 0x2c2   :  { %v309_v39 = vmul.f32 %v301_v22, %v297_v30  ;;  %v306_v40 = vmul.f32 %v302_v29, %v286_v35  ;;  %v294_v41 = vmul.f32 %v286_v35, %v242_v55  ;;  %v318_v52 = vsel %vm312_vm4, %v311_v48, 0.0 }
 0x2c4   :  { %v314_v43 = vsel %vm312_vm4, %v309_v39, 0.0  ;;  %338 = vperm.xlu1 %402, %v306_v40   ;;  %v298_v44 = vsub.f32 %v290_v37, %v294_v41 }
 0x2c5   :  { %v315_v49 = vadd.f32 %v314_v43, %v313_v45 }
 0x2c6   :  { %v310_v46 = vmul.f32 %v302_v29, %v298_v44 }
 0x2c8   :  { %v316_v50 = vsel %vm312_vm4, %v310_v46, 0.0  ;;  %343 = vperm.xlu1 %402, %v307_v47  }
 0x2c9   :  { %v317_v51 = vadd.f32 %v316_v50, %v315_v49 }
 0x2cb   :  { %v319_v53 = vadd.f32 %v318_v52, %v317_v51 }
 0x2cd   :  { %v320_v54 = vrot.slane %v319_v53, 4 }
 0x2cf   :  { %v321_v55 = vadd.f32 %v320_v54, %v319_v53 }
 0x2d1   :  { %v322_v56 = vrot.slane %v321_v55, 2 }
 0x2d3   :  { %v323_v57 = vadd.f32 %v322_v56, %v321_v55 }
 0x2d5   :  { %v324_v58 = vrot.slane %v323_v57, 1 }
 0x2d7   :  { %v325_v59 = vadd.f32 %v324_v58, %v323_v57 }
 0x2d9   :  { %361 = vperm.xlu0 %403, %v325_v59  }
 0x333   :  { %v329_v60 = vpop.permute.xlu1 %328 }
 0x334   :  { %v346_v1 = vmul.f32 %v329_v60, %v557_v32 }
 0x33b   :  { %v334_v61 = vpop.permute.xlu0 %333 }
 0x33c   :  { %v347_v62 = vmul.f32 %v334_v61, %v562_v34 }
 0x33e   :  { %v350_v3 = vadd.f32 %v347_v62, %v346_v1 }
 0x33f   :  { %v339_v63 = vpop.permute.xlu1 %338 }
 0x340   :  { %v348_v2 = vmul.f32 %v555_v31, %v339_v63 }
 0x342   :  { %v351_v5 = vadd.f32 %v350_v3, %v348_v2 }
 0x343   :  { %v344_v4 = vpop.permute.xlu1 %343 }
 0x344   :  { %v349_v7 = vmul.f32 %v560_v33, %v344_v4 }
 0x346   :  { %v352_v8 = vadd.f32 %v351_v5, %v349_v7 }
 0x348   :  { %v353_v9 = vrot.slane %v352_v8, 4 }
 0x34a   :  { %v354_v10 = vadd.f32 %v353_v9, %v352_v8 }
 0x34c   :  { %v355_v11 = vrot.slane %v354_v10, 2 }
 0x34e   :  { %v356_v12 = vadd.f32 %v355_v11, %v354_v10 }
 0x350   :  { %v357_v13 = vrot.slane %v356_v12, 1 }
 0x352   :  { %v358_v14 = vadd.f32 %v357_v13, %v356_v12 }
 0x354   :  { %v362_v34 = vpop.permute.xlu0 %361 }
 0x355   :  { %v364_v16 = vadd.f32 %v362_v34, %v358_v14 }
 0x357   :  { %365 = vst [vmem:[#allocation2] sm:$0x1] %v364_v16 }
 0x358   :  { %431 = shalt.err (!%p428_p4)
}
 0x359   :  { %375 = dma.vmem_to_hbm [thread:$0]  %s373_s7, 16, %s626_s8, [#allocation3]  }
 0x35a   :  { %440 = dma.done.wait [#allocation3], 16  }
 0x35b   :  { %441 = vsyncadd [#allocation3], 4294967280 }
 0x35c   :  { %379 = vsyncpa [#allocation3], 1 }

</bundles_post_ra>
